<compile_context>
chip_gen: v7x
topology: tpu7x:2x2x1
jax: 0.10.0
libtpu: 0.0.40
codegen_flags: <defaults>
</compile_context>

<pallas_src>
import functools

import jax
import jax.numpy as jnp
from jax import lax
from jax.experimental import pallas as pl
from jax.experimental.pallas import tpu as pltpu


def _round_up(x, m):
    return ((x + m - 1) // m) * m


def _default_vmem_limit_bytes():
    # ~100 MiB on 128-MiB parts (v5e/v6e), 48 MiB on 64-MiB-per-TC v7x.
    try:
        cap = pltpu.get_tpu_info().vmem_capacity_bytes
        return int(min(cap - (16 << 20), 100 << 20))
    except Exception:
        return 48 << 20


_VMEM_LIMIT_BYTES = _default_vmem_limit_bytes()


def _linear_kernel_f32out(x_ref, w_ref, b_ref, o_ref):
    # x_ref: [tm, tk], w_ref: [tn, tk] (PyTorch layout), b_ref: [1, tn], o_ref: [tm, tn] f32.
    # o_ref is VMEM-resident across the K ("arbitrary") axis -> accumulate directly into it.
    k = pl.program_id(2)

    @pl.when(k == 0)
    def _():
        o_ref[...] = jnp.broadcast_to(b_ref[...], o_ref.shape)

    o_ref[...] += lax.dot_general(
        x_ref[...], w_ref[...],
        dimension_numbers=(((1,), (1,)), ((), ())),   # contract D of x with D of W (trans-B)
        preferred_element_type=jnp.float32,
    )


def _linear_kernel_acc(x_ref, w_ref, b_ref, o_ref, acc_ref):
    # Same as above but with an f32 scratch accumulator for non-f32 output dtypes.
    k = pl.program_id(2)

    @pl.when(k == 0)
    def _():
        acc_ref[...] = jnp.broadcast_to(b_ref[...], acc_ref.shape)

    acc_ref[...] += lax.dot_general(
        x_ref[...], w_ref[...],
        dimension_numbers=(((1,), (1,)), ((), ())),
        preferred_element_type=jnp.float32,
    )

    @pl.when(k == pl.num_programs(2) - 1)
    def _():
        o_ref[...] = acc_ref[...].astype(o_ref.dtype)


@functools.partial(jax.jit, static_argnames=("tm", "tn", "tk", "compute_dtype"))
def softmax_classifier_forward(
    x, weight, bias, *, tm=256, tn=512, tk=512, compute_dtype=None
):
    """x: [B, D], weight: [C, D] (PyTorch nn.Linear layout), bias: [C] -> logits [B, C]."""
    B, D = x.shape
    C, D2 = weight.shape
    assert D == D2, "weight must be [num_classes, input_dim]"
    out_dtype = x.dtype

    # Optional reduced-precision compute path (cast BEFORE padding -> half the pad bytes).
    if compute_dtype is not None:
        x = x.astype(compute_dtype)
        weight = weight.astype(compute_dtype)
    cdtype = jnp.dtype(x.dtype)
    sub = 8 if cdtype.itemsize >= 4 else 16  # native sublane multiple for this dtype

    # M tile: cover an odd batch with a single, minimally padded tile when possible
    # (B=136 -> tm=136, Mp=136 instead of padding to 256).
    b_rounded = _round_up(B, sub)
    if b_rounded <= max(tm, sub):
        tm = b_rounded
    else:
        tm = max((tm // sub) * sub, sub)
    tn = min(tn, _round_up(C, 128))
    tk = min(tk, _round_up(D, 128))
    assert tm % sub == 0 and tn % 128 == 0 and tk % 128 == 0, "invalid tile sizes"

    Mp = _round_up(B, tm)
    Np = _round_up(C, tn)
    Kp = _round_up(D, tk)

    # Zero-padding is exact for matmul + bias; skip the pad pass entirely when aligned.
    if (Mp, Kp) != (B, D):
        x = jnp.pad(x, ((0, Mp - B), (0, Kp - D)))
    if (Np, Kp) != (C, D):
        weight = jnp.pad(weight, ((0, Np - C), (0, Kp - D)))  # stays [C, D] layout
    b_p = jnp.pad(bias, (0, Np - C)).reshape(1, Np).astype(jnp.float32)

    grid = (Mp // tm, Np // tn, Kp // tk)

    itemsize = cdtype.itemsize
    cost = pl.CostEstimate(
        flops=2 * Mp * Kp * Np,
        transcendentals=0,
        bytes_accessed=(
            Mp * Kp * itemsize
            + Np * Kp * itemsize
            + Mp * Np * jnp.dtype(out_dtype).itemsize
            + Np * 4
        ),
    )

    in_specs = [
        pl.BlockSpec((tm, tk), lambda i, j, k: (i, k)),        # x tile
        pl.BlockSpec((tn, tk), lambda i, j, k: (j, k)),        # weight tile, [C, D] layout
        pl.BlockSpec((1, tn), lambda i, j, k: (0, j)),         # bias, resident across K
    ]
    out_spec = pl.BlockSpec((tm, tn), lambda i, j, k: (i, j))

    if jnp.dtype(out_dtype) == jnp.float32:
        kernel = _linear_kernel_f32out
        scratch = []
    else:
        kernel = _linear_kernel_acc
        scratch = [pltpu.VMEM((tm, tn), jnp.float32)]

    out = pl.pallas_call(
        kernel,
        out_shape=jax.ShapeDtypeStruct((Mp, Np), out_dtype),
        grid_spec=pl.GridSpec(
            grid=grid,
            in_specs=in_specs,
            out_specs=out_spec,
            scratch_shapes=scratch,
        ),
        compiler_params=pltpu.CompilerParams(
            dimension_semantics=("parallel", "parallel", "arbitrary"),
            vmem_limit_bytes=_VMEM_LIMIT_BYTES,
        ),
        cost_estimate=cost,
    )(x, weight, b_p)

    return out[:B, :C]


if __name__ == "__main__":
    key = jax.random.PRNGKey(0)

    def make_case(key, batch, input_dim, num_classes):
        kx, kw, kb = jax.random.split(key, 3)
        bound = 1.0 / (input_dim ** 0.5)
        weight = jax.random.uniform(
            kw, (num_classes, input_dim), minval=-bound, maxval=bound,
            dtype=jnp.float32,
        )  # PyTorch layout [C, D]
        bias = jax.random.uniform(
            kb, (num_classes,), minval=-bound, maxval=bound, dtype=jnp.float32
        )
        x = jax.random.normal(kx, (batch, input_dim), dtype=jnp.float32)
        return x, weight, bias

    # Case 1: tiny classifier head implied by the module.
    k1, k2 = jax.random.split(key)
    x, weight, bias = make_case(k1, batch=8, input_dim=32, num_classes=10)
    out = jax.block_until_ready(softmax_classifier_forward(x, weight, bias))
    ref = x @ weight.T + bias
    assert out.shape == (8, 10)
    assert jnp.allclose(out, ref, atol=1e-5, rtol=1e-5)

    # Case 2: non-aligned shapes exercising the clamped tm (=136, no 256-pad),
    # trans-B weight path and padding; default (large) tiles.
    x2, w2, b2 = make_case(k2, batch=136, input_dim=400, num_classes=272)
    out2 = jax.block_until_ready(softmax_classifier_forward(x2, w2, b2))
    ref2 = x2 @ w2.T + b2
    assert out2.shape == (136, 272)
    assert jnp.allclose(out2, ref2, atol=1e-4, rtol=1e-4)

    print("KERNEL_OK")
</pallas_src>

<mosaic_0001>
module attributes {stable_mosaic.version = 11 : i64} {
  func.func @_linear_kernel_f32out(%arg0: i32, %arg1: i32, %arg2: i32, %arg3: memref<8x128xf32, #tpu.memory_space<vmem>>, %arg4: memref<128x128xf32, #tpu.memory_space<vmem>>, %arg5: memref<1x128xf32, #tpu.memory_space<vmem>>, %arg6: memref<8x128xf32, #tpu.memory_space<vmem>>) attributes {dimension_semantics = [#tpu.dimension_semantics<parallel>, #tpu.dimension_semantics<parallel>, #tpu.dimension_semantics<arbitrary>], iteration_bounds = array<i64: 1, 1, 1>, scalar_prefetch = 0 : i64, scratch_operands = 0 : i64, tpu.core_type = #tpu.core_type<tc>, window_params = [{transform_indices = @transform_0, window_bounds = array<i64: 8, 128>}, {transform_indices = @transform_1, window_bounds = array<i64: 128, 128>}, {transform_indices = @transform_2, window_bounds = array<i64: 1, 128>}, {transform_indices = @transform_3, window_bounds = array<i64: 8, 128>}]} {
    %c0_i32 = arith.constant 0 : i32
    %0 = arith.cmpi eq, %arg2, %c0_i32 : i32
    %1 = arith.extui %0 : i1 to i32
    %c0_i32_0 = arith.constant 0 : i32
    %2 = arith.cmpi ne, %1, %c0_i32_0 : i32
    scf.if %2 {
      %c0_8 = arith.constant 0 : index
      %c0_9 = arith.constant 0 : index
      %9 = vector.load %arg5[%c0_8, %c0_9] : memref<1x128xf32, #tpu.memory_space<vmem>>, vector<1x128xf32>
      %10 = vector.shape_cast %9 : vector<1x128xf32> to vector<1x128xf32>
      %11 = vector.broadcast %10 : vector<1x128xf32> to vector<8x128xf32>
      %c0_10 = arith.constant 0 : index
      %c0_11 = arith.constant 0 : index
      %12 = vector.load %arg6[%c0_10, %c0_11] : memref<8x128xf32, #tpu.memory_space<vmem>>, vector<8x128xf32>
      tpu.vector_store %arg6[%c0_10, %c0_11], %11 {strides = array<i32>} : memref<8x128xf32, #tpu.memory_space<vmem>>, vector<8x128xf32>,
    } else {
    }
    %c0 = arith.constant 0 : index
    %c0_1 = arith.constant 0 : index
    %3 = vector.load %arg6[%c0, %c0_1] : memref<8x128xf32, #tpu.memory_space<vmem>>, vector<8x128xf32>
    %c0_2 = arith.constant 0 : index
    %c0_3 = arith.constant 0 : index
    %4 = vector.load %arg3[%c0_2, %c0_3] : memref<8x128xf32, #tpu.memory_space<vmem>>, vector<8x128xf32>
    %c0_4 = arith.constant 0 : index
    %c0_5 = arith.constant 0 : index
    %5 = vector.load %arg4[%c0_4, %c0_5] : memref<128x128xf32, #tpu.memory_space<vmem>>, vector<128x128xf32>
    %cst = arith.constant dense<0.000000e+00> : vector<8x128xf32>
    %6 = tpu.matmul %4, %5, %cst {dimension_numbers = #tpu.dot_dimension_numbers<[1], [1], [0], [0], [0, 0, 1, 0], [], []>} : vector<8x128xf32>, vector<128x128xf32>, vector<8x128xf32> -> vector<8x128xf32>
    %7 = arith.addf %3, %6 : vector<8x128xf32>
    %c0_6 = arith.constant 0 : index
    %c0_7 = arith.constant 0 : index
    %8 = vector.load %arg6[%c0_6, %c0_7] : memref<8x128xf32, #tpu.memory_space<vmem>>, vector<8x128xf32>
    tpu.vector_store %arg6[%c0_6, %c0_7], %7 {strides = array<i32>} : memref<8x128xf32, #tpu.memory_space<vmem>>, vector<8x128xf32>,
    return
  }
  func.func @transform_0(%arg0: i32, %arg1: i32, %arg2: i32) -> (i32, i32) {
    %c0_i32 = arith.constant 0 : i32
    return %arg0, %arg2 : i32, i32
  }
  func.func @transform_1(%arg0: i32, %arg1: i32, %arg2: i32) -> (i32, i32) {
    %c0_i32 = arith.constant 0 : i32
    return %arg1, %arg2 : i32, i32
  }
  func.func @transform_2(%arg0: i32, %arg1: i32, %arg2: i32) -> (i32, i32) {
    %c0_i32 = arith.constant 0 : i32
    %c0_i32_0 = arith.constant 0 : i32
    return %c0_i32, %arg1 : i32, i32
  }
  func.func @transform_3(%arg0: i32, %arg1: i32, %arg2: i32) -> (i32, i32) {
    %c0_i32 = arith.constant 0 : i32
    return %arg0, %arg1 : i32, i32
  }
}

</mosaic_0001>

<bundles_post_ra>
// kernel: softmax_classifier_forward.1
= control target key start
LH: loop header
LB: loop body
LE: loop exit
PB: predicated region body
PF: predicated region fallthrough
CT: control target
= control target key end

     0   :  { %v236_v2 = vmov 0.0|0.0   ;;  %vm237_vm0 = vmmov 0   ;;  %v238_v4 = vmov 0.0   ;;  %s326_s0 = inlined_call_operand.vmem [shape: f32[8,128], index: 0, kind: input, shape index: {}]   ;;  %s327_s1 = inlined_call_operand.vmem [shape: f32[128,128], index: 1, kind: input, shape index: {}]   ;;  %s328_s2 = inlined_call_operand.vmem [shape: f32[1,128], index: 2, kind: input, shape index: {}]   ;;  %s329_s3 = inlined_call_operand.hbm [shape: f32[8,128], index: 3, kind: output, shape index: {}]  }
   0x1   :  { %v29_v0 = vld [vmem:[%s327_s1] sm:$0xff]  ;;  %v30_v1 = vld [vmem:[%s327_s1 + $0x8] sm:$0xff]  ;;  %184 = vmatprep.subr.bf16.mxu0 %v236_v2  ;;  %181 = vmatprep.mubr.msk.f32.mxu0 %vm237_vm0, %v238_v4  ;;  %v31_v5 = vld [vmem:[%s327_s1 + $0x10] sm:$0xff] }
   0x2   :  { %v185_v3 = vpack.c.bf16 %v30_v1, %v29_v0  ;;  %v32_v6 = vld [vmem:[%s327_s1 + $0x18] sm:$0xff] }
   0x4   :  { %186 = vmatpush3.bf16.xpose.msra.mxu0 %v185_v3 }
   0x5   :  { %187 = vmatprep.subr.bf16.mxu0 %v236_v2 }
   0x6   :  { %8 = vsyncpa [#allocation3], 0  ;;  %v188_v7 = vpack.c.bf16 %v32_v6, %v31_v5  ;;  %v33_v8 = vld [vmem:[%s327_s1 + $0x20] sm:$0xff]  ;;  %v34_v9 = vld [vmem:[%s327_s1 + $0x28] sm:$0xff]  ;;  %s239_s21 = smov [#allocation2]  }
   0x7   :  { %v191_v10 = vpack.c.bf16 %v34_v9, %v33_v8  ;;  %v35_v11 = vld [vmem:[%s327_s1 + $0x30] sm:$0xff]  ;;  %v36_v12 = vld [vmem:[%s327_s1 + $0x38] sm:$0xff]  ;;  %v37_v14 = vld [vmem:[%s327_s1 + $0x40] sm:$0xff]  ;;  %s123_s22 = sshll.u32 %s239_s21, 4  ;;  %s124_s22 = int_to_ptr.vmem [resolvable:$true] %s123_s22 }
   0x8   :  { %v194_v13 = vpack.c.bf16 %v36_v12, %v35_v11  ;;  %v38_v15 = vld [vmem:[%s327_s1 + $0x48] sm:$0xff]  ;;  %v39_v17 = vld [vmem:[%s327_s1 + $0x50] sm:$0xff]  ;;  %v40_v18 = vld [vmem:[%s327_s1 + $0x58] sm:$0xff]  ;;  %s212_s23 = scalar_lea.vmem %s124_s22, 128  ;;  %p217_p1 = scmp.lt.s32.totalorder %s124_s22, %s124_s22 }
   0x9   :  { %v197_v16 = vpack.c.bf16 %v38_v15, %v37_v14  ;;  %v200_v19 = vpack.c.bf16 %v40_v18, %v39_v17  ;;  %v41_v20 = vld [vmem:[%s327_s1 + $0x60] sm:$0xff]  ;;  %v42_v21 = vld [vmem:[%s327_s1 + $0x68] sm:$0xff]  ;;  %v43_v23 = vld [vmem:[%s327_s1 + $0x70] sm:$0xff]  ;;  %p213_p0 = scmp.ne.s32.totalorder %s124_s22, %s212_s23  ;;  %p218_p2 = scmp.lt.s32.totalorder %s212_s23, %s212_s23 }
   0xa   :  { %v203_v22 = vpack.c.bf16 %v42_v21, %v41_v20  ;;  %v44_v24 = vld [vmem:[%s327_s1 + $0x78] sm:$0xff]  ;;  %v28_v26 = vld [vmem:[%s326_s0] sm:$0xff] }
   0xb   :  { %v206_v25 = vpack.c.bf16 %v44_v24, %v43_v23  ;;  %v131_v27 = vld [vmem:[%s328_s2] ss:$0 sm:$0xff]  ;;  %p219_p3 = por %p218_p2, %p217_p1 }
   0xc   :  { %189 = vmatpush3.bf16.xpose.msra.mxu0 %v188_v7 }
   0xd   :  { %190 = vmatprep.subr.bf16.mxu0 %v236_v2  ;;  %p220_p4 = pnand %p219_p3, %p213_p0 }
  0x14   :  { %192 = vmatpush3.bf16.xpose.msra.mxu0 %v191_v10 }
  0x15   :  { %193 = vmatprep.subr.bf16.mxu0 %v236_v2 }
  0x1c   :  { %195 = vmatpush3.bf16.xpose.msra.mxu0 %v194_v13 }
  0x1d   :  { %196 = vmatprep.subr.bf16.mxu0 %v236_v2 }
  0x24   :  { %198 = vmatpush3.bf16.xpose.msra.mxu0 %v197_v16 }
  0x25   :  { %199 = vmatprep.subr.bf16.mxu0 %v236_v2 }
  0x2c   :  { %201 = vmatpush3.bf16.xpose.msra.mxu0 %v200_v19 }
  0x2d   :  { %202 = vmatprep.subr.bf16.mxu0 %v236_v2 }
  0x34   :  { %204 = vmatpush3.bf16.xpose.msra.mxu0 %v203_v22 }
  0x35   :  { %205 = vmatprep.subr.bf16.mxu0 %v236_v2 }
  0x3c   :  { %207 = vmatpush3.bf16.xpose.msra.mxu0 %v206_v25 }
  0x43   :  { %182 = vmatmul.mubr.f32.vlgmr.msra.gmra.mrb[0].mxu0 %v28_v26 }
 0x116   :  { %v111_v28 = vpop.f32.mrb[0].mxu0 }
 0x117   :  { %v115_v29 = vadd.f32 %v131_v27, %v111_v28  ;;  %v183_v30 = vpop.f32.mrb[1].mxu0 }
 0x119   :  { %116 = vst [vmem:[#allocation2] sm:$0xff] %v115_v29 }
 0x11a   :  { %223 = shalt.err (!%p220_p4)
}
 0x11b   :  { %s224_s24 = scalar_lea.hbm %s329_s3, 128 }
 0x11c   :  { %p225_p5 = scmp.ne.s32.totalorder %s329_s3, %s224_s24  ;;  %p228_p6 = scmp.lt.u32.totalorder %s224_s24, %s329_s3 }
 0x11e   :  { %p230_p7 = pnand %p228_p6, %p225_p5 }
 0x120   :  { %233 = shalt.err (!%p230_p7)
}
 0x121   :  { %126 = dma.vmem_to_hbm [thread:$0]  %s124_s22, 128, %s329_s3, [#allocation3]  }
 0x122   :  { %234 = dma.done.wait [#allocation3], 128  }
 0x123   :  { %235 = vsyncadd [#allocation3], 4294967168 }
 0x124   :  { %130 = vsyncpa [#allocation3], 1 }

</bundles_post_ra>
